<compile_context>
chip_gen: v7x
topology: tpu7x:2x2x1
jax: 0.10.0
libtpu: 0.0.40
codegen_flags: <defaults>
</compile_context>

<pallas_src>
import jax
import jax.numpy as jnp
from jax import lax
from jax.experimental import pallas as pl
from jax.experimental.pallas import tpu as pltpu


def _make_temporal_block_kernel(K, dilation, N, pad, tile):
    """Kernel closure over the static conv geometry (stride = 1, eval mode)."""
    PQ = pad * N              # causal pad in lanes of the batch-minor slab
    WEXT = tile + PQ          # conv1 extended lanes (PQ extra = conv2 left ctx)
    WIN = tile + 2 * PQ       # x lanes per tile (2*PQ causal halo on the left)

    def kernel(xw_ref, w1_ref, b1_ref, w2_ref, b2_ref, wd_ref, bd_ref, out_ref):
        g0 = pl.program_id(0) * tile          # absolute output-lane offset
        xt = xw_ref[0]                        # (Cin, WIN) bf16 halo window

        # ---- conv1 (causal; chomp implicit) on WEXT extended lanes ----------
        # Tap k reads the window shifted by k*dilation*N lanes; acc starts from
        # the k=0 tap.  K small-depth MXU dots; fold them into one depth-K*C
        # dot at production channel counts (see header).
        acc1 = jnp.dot(w1_ref[0], xt[:, 0:WEXT],
                       preferred_element_type=jnp.float32)
        for k in range(1, K):
            off = k * dilation * N
            acc1 = acc1 + jnp.dot(w1_ref[k], xt[:, off:off + WEXT],
                                  preferred_element_type=jnp.float32)
        h1 = jnp.maximum(acc1 + b1_ref[...], 0.0)      # bias + ReLU in f32
        # Zero the extended lanes whose absolute h1 index is negative: they
        # double as conv2's causal left padding (only tile 0 has any).
        lane = lax.broadcasted_iota(jnp.int32, (1, WEXT), 1)
        h1 = jnp.where(lane >= PQ - g0, h1, 0.0)
        h1b = h1.astype(jnp.bfloat16)                  # bf16 operands for MXU

        # ---- conv2 (causal; chomp implicit) on the zero-prefixed h1 ---------
        acc2 = jnp.dot(w2_ref[0], h1b[:, 0:tile],
                       preferred_element_type=jnp.float32)
        for k in range(1, K):
            off = k * dilation * N
            acc2 = acc2 + jnp.dot(w2_ref[k], h1b[:, off:off + tile],
                                  preferred_element_type=jnp.float32)
        h2 = jnp.maximum(acc2 + b2_ref[...], 0.0)      # bias + ReLU (dropout=id)

        # ---- residual path: 1x1 conv on the un-padded input lanes -----------
        res = jnp.dot(wd_ref[0], xt[:, 2 * PQ:2 * PQ + tile],
                      preferred_element_type=jnp.float32) + bd_ref[...]

        # Lane-dense (multiple-of-128) unmasked store of the output tile.
        out_ref[...] = jnp.maximum(h2 + res, 0.0)

    return kernel


def temporal_block_forward(x, w1, b1, w2, b2, wd, bd, *, kernel_size, dilation,
                           lane_tile=128):
    """x: (N, Cin, L) float32.  Weights are the effective (weight-normalized) ones."""
    N, Cin, L = x.shape
    Cout = w1.shape[0]
    K = kernel_size
    pad = (K - 1) * dilation
    PQ = pad * N
    NL = N * L
    n_tiles = pl.cdiv(NL, lane_tile)
    NLP = n_tiles * lane_tile
    WIN = lane_tile + 2 * PQ

    # Layout staging (fused in XLA): batch-minor lane-dense slab (lane g=t*N+b),
    # 2*pad*N causal zeros in front, zero right pad to a tile multiple, then the
    # per-tile overlapping halo windows.  In a full TCN stack keep the slab
    # format across layers (see header); at production N*L replace the window
    # stack with pl.Element halo windows or a manual halo DMA.
    x_slab = jnp.transpose(x, (1, 2, 0)).reshape(Cin, NL)
    xs_p = jnp.pad(x_slab, ((0, 0), (2 * PQ, NLP - NL))).astype(jnp.bfloat16)
    xw = jnp.stack([xs_p[:, t * lane_tile:t * lane_tile + WIN]
                    for t in range(n_tiles)], axis=0)     # (n_tiles, Cin, WIN)

    # Weights as (K, Cout, Cin) bf16 so each tap is a leading-axis ref index.
    w1t = jnp.transpose(w1, (2, 0, 1)).astype(jnp.bfloat16)
    w2t = jnp.transpose(w2, (2, 0, 1)).astype(jnp.bfloat16)
    wdt = jnp.transpose(wd, (2, 0, 1)).astype(jnp.bfloat16)
    b1c = b1.reshape(Cout, 1).astype(jnp.float32)
    b2c = b2.reshape(Cout, 1).astype(jnp.float32)
    bdc = bd.reshape(Cout, 1).astype(jnp.float32)

    kernel = _make_temporal_block_kernel(K, dilation, N, pad, lane_tile)

    out2d = pl.pallas_call(
        kernel,
        out_shape=jax.ShapeDtypeStruct((Cout, NLP), jnp.float32),
        grid_spec=pltpu.PrefetchScalarGridSpec(
            num_scalar_prefetch=0,
            grid=(n_tiles,),   # lane-tile axis: pipelined + megacore-parallel
            in_specs=[
                pl.BlockSpec((1, Cin, WIN), lambda i: (i, 0, 0)),       # x halo tile
                pl.BlockSpec((K, Cout, Cin), lambda i: (0, 0, 0)),      # w1
                pl.BlockSpec((Cout, 1), lambda i: (0, 0)),              # b1
                pl.BlockSpec((K, Cout, Cout), lambda i: (0, 0, 0)),     # w2
                pl.BlockSpec((Cout, 1), lambda i: (0, 0)),              # b2
                pl.BlockSpec((1, Cout, Cin), lambda i: (0, 0, 0)),      # wd
                pl.BlockSpec((Cout, 1), lambda i: (0, 0)),              # bd
            ],
            out_specs=pl.BlockSpec((Cout, lane_tile), lambda i: (0, i)),
        ),
        compiler_params=pltpu.CompilerParams(
            dimension_semantics=("parallel",),
            vmem_limit_bytes=32 * 1024 * 1024,
        ),
    )(xw, w1t, b1c, w2t, b2c, wdt, bdc)

    # Undo the layout plumbing: (Cout, t*N + b) -> (N, Cout, L).
    return jnp.transpose(out2d[:, :NL].reshape(Cout, L, N), (2, 0, 1))


def weight_norm_effective(v, g):
    """PyTorch weight_norm (dim=0): w = g * v / ||v|| , norm over (in, k)."""
    norm = jnp.sqrt(jnp.sum(v * v, axis=(1, 2), keepdims=True))
    return g.reshape(-1, 1, 1) * v / norm


def reference_forward(x, w1, b1, w2, b2, wd, bd, *, kernel_size, dilation):
    """Pure-JAX reference matching the PyTorch module (eval mode), mirroring the
    kernel's bf16 operand quantization (f32 accumulation on both sides)."""
    pad = (kernel_size - 1) * dilation
    L = x.shape[2]
    q = lambda a: a.astype(jnp.bfloat16).astype(jnp.float32)

    def conv1d(inp, w, b, p, d):
        y = lax.conv_general_dilated(
            inp, w, window_strides=(1,), padding=[(p, p)], rhs_dilation=(d,),
            dimension_numbers=("NCH", "OIH", "NCH"),
            preferred_element_type=jnp.float32)
        return y + b.reshape(1, -1, 1)

    xq = q(x)
    h = conv1d(xq, q(w1), b1, pad, dilation)[:, :, :L]     # conv1 + chomp
    h = jnp.maximum(h, 0.0)                                # relu1 (dropout1=id)
    h = conv1d(q(h), q(w2), b2, pad, dilation)[:, :, :L]   # conv2 + chomp
    h = jnp.maximum(h, 0.0)                                # relu2 (dropout2=id)
    res = conv1d(xq, q(wd), bd, 0, 1)                      # downsample (1x1)
    return jnp.maximum(h + res, 0.0)


if __name__ == "__main__":
    # Small shapes consistent with a TemporalBlock; L chosen so the lane axis
    # (N*L = 256) spans two 128-lane tiles and exercises the pipelined grid.
    N, Cin, Cout, L = 2, 4, 8, 128
    K, stride, dilation = 3, 1, 2
    assert stride == 1, "kernel assumes stride=1 (as in the module)"

    key = jax.random.PRNGKey(0)
    k_x, k_v1, k_g1, k_b1, k_v2, k_g2, k_b2, k_wd, k_bd = jax.random.split(key, 9)

    x = jax.random.normal(k_x, (N, Cin, L), jnp.float32)

    # Deterministic synthetic parameters (module init: normal(0, 0.01) weights).
    v1 = 0.01 * jax.random.normal(k_v1, (Cout, Cin, K), jnp.float32)
    g1 = 1.0 + 0.1 * jax.random.normal(k_g1, (Cout,), jnp.float32)
    b1 = 0.1 * jax.random.normal(k_b1, (Cout,), jnp.float32)
    v2 = 0.01 * jax.random.normal(k_v2, (Cout, Cout, K), jnp.float32)
    g2 = 1.0 + 0.1 * jax.random.normal(k_g2, (Cout,), jnp.float32)
    b2 = 0.1 * jax.random.normal(k_b2, (Cout,), jnp.float32)

    # Effective (weight-normalized) conv weights -- parameter glue in plain JAX.
    w1 = weight_norm_effective(v1, g1)
    w2 = weight_norm_effective(v2, g2)

    # downsample: 1x1 conv because n_inputs != n_outputs here; if they were
    # equal, pass an identity weight / zero bias (res = x; wasteful, not wrong).
    if Cin != Cout:
        wd = 0.01 * jax.random.normal(k_wd, (Cout, Cin, 1), jnp.float32)
        bd = 0.1 * jax.random.normal(k_bd, (Cout,), jnp.float32)
    else:
        wd = jnp.eye(Cout, dtype=jnp.float32)[:, :, None]
        bd = jnp.zeros((Cout,), jnp.float32)

    out = temporal_block_forward(x, w1, b1, w2, b2, wd, bd,
                                 kernel_size=K, dilation=dilation)
    out = jax.block_until_ready(out)

    ref = reference_forward(x, w1, b1, w2, b2, wd, bd,
                            kernel_size=K, dilation=dilation)
    assert out.shape == (N, Cout, L)
    # bf16 operands / f32 accumulation on both sides -> only summation-order and
    # bf16 re-quantization-of-h1 differences remain.
    assert jnp.allclose(out, ref, atol=1e-2, rtol=1e-2), "mismatch vs reference"

    # TODO(synk): dropout layers are treated as identity (eval mode); training-mode
    # stochastic dropout is not implemented in the kernel.
    print("KERNEL_OK")
</pallas_src>

<mosaic_0001>
module attributes {stable_mosaic.version = 11 : i64} {
  func.func @kernel(%arg0: i32, %arg1: memref<1x4x144xbf16, #tpu.memory_space<vmem>>, %arg2: memref<3x8x4xbf16, #tpu.memory_space<vmem>>, %arg3: memref<8x1xf32, #tpu.memory_space<vmem>>, %arg4: memref<3x8x8xbf16, #tpu.memory_space<vmem>>, %arg5: memref<8x1xf32, #tpu.memory_space<vmem>>, %arg6: memref<1x8x4xbf16, #tpu.memory_space<vmem>>, %arg7: memref<8x1xf32, #tpu.memory_space<vmem>>, %arg8: memref<8x128xf32, #tpu.memory_space<vmem>>) attributes {dimension_semantics = [#tpu.dimension_semantics<parallel>], iteration_bounds = array<i64: 2>, scalar_prefetch = 0 : i64, scratch_operands = 0 : i64, tpu.core_type = #tpu.core_type<tc>, window_params = [{transform_indices = @transform_0, window_bounds = array<i64: 1, 4, 144>}, {pipeline_mode = #tpu.pipeline_mode<synchronous>, transform_indices = @transform_1, window_bounds = array<i64: 3, 8, 4>}, {pipeline_mode = #tpu.pipeline_mode<synchronous>, transform_indices = @transform_2, window_bounds = array<i64: 8, 1>}, {pipeline_mode = #tpu.pipeline_mode<synchronous>, transform_indices = @transform_3, window_bounds = array<i64: 3, 8, 8>}, {pipeline_mode = #tpu.pipeline_mode<synchronous>, transform_indices = @transform_4, window_bounds = array<i64: 8, 1>}, {pipeline_mode = #tpu.pipeline_mode<synchronous>, transform_indices = @transform_5, window_bounds = array<i64: 1, 8, 4>}, {pipeline_mode = #tpu.pipeline_mode<synchronous>, transform_indices = @transform_6, window_bounds = array<i64: 8, 1>}, {transform_indices = @transform_7, window_bounds = array<i64: 8, 128>}]} {
    %c128_i32 = arith.constant 128 : i32
    %0 = arith.muli %arg0, %c128_i32 : i32
    %c0 = arith.constant 0 : index
    %c0_0 = arith.constant 0 : index
    %c0_1 = arith.constant 0 : index
    %1 = vector.load %arg1[%c0, %c0_0, %c0_1] : memref<1x4x144xbf16, #tpu.memory_space<vmem>>, vector<1x4x144xbf16>
    %2 = vector.shape_cast %1 : vector<1x4x144xbf16> to vector<4x144xbf16>
    %c0_2 = arith.constant 0 : index
    %c0_3 = arith.constant 0 : index
    %c0_4 = arith.constant 0 : index
    %3 = vector.load %arg2[%c0_2, %c0_3, %c0_4] : memref<3x8x4xbf16, #tpu.memory_space<vmem>>, vector<1x8x4xbf16>
    %4 = vector.shape_cast %3 : vector<1x8x4xbf16> to vector<8x4xbf16>
    %5 = vector.extract_strided_slice %2 {offsets = [0, 0], sizes = [4, 136], strides = [1, 1]} : vector<4x144xbf16> to vector<4x136xbf16>
    %cst = arith.constant dense<0.000000e+00> : vector<8x136xf32>
    %6 = tpu.matmul %4, %5, %cst {dimension_numbers = #tpu.dot_dimension_numbers<[1], [0], [0], [1], [0, 0, 1, 1], [], []>} : vector<8x4xbf16>, vector<4x136xbf16>, vector<8x136xf32> -> vector<8x136xf32>
    %c1 = arith.constant 1 : index
    %c0_5 = arith.constant 0 : index
    %c0_6 = arith.constant 0 : index
    %7 = vector.load %arg2[%c1, %c0_5, %c0_6] : memref<3x8x4xbf16, #tpu.memory_space<vmem>>, vector<1x8x4xbf16>
    %8 = vector.shape_cast %7 : vector<1x8x4xbf16> to vector<8x4xbf16>
    %9 = vector.extract_strided_slice %2 {offsets = [0, 4], sizes = [4, 136], strides = [1, 1]} : vector<4x144xbf16> to vector<4x136xbf16>
    %cst_7 = arith.constant dense<0.000000e+00> : vector<8x136xf32>
    %10 = tpu.matmul %8, %9, %cst_7 {dimension_numbers = #tpu.dot_dimension_numbers<[1], [0], [0], [1], [0, 0, 1, 1], [], []>} : vector<8x4xbf16>, vector<4x136xbf16>, vector<8x136xf32> -> vector<8x136xf32>
    %11 = arith.addf %6, %10 : vector<8x136xf32>
    %c2 = arith.constant 2 : index
    %c0_8 = arith.constant 0 : index
    %c0_9 = arith.constant 0 : index
    %12 = vector.load %arg2[%c2, %c0_8, %c0_9] : memref<3x8x4xbf16, #tpu.memory_space<vmem>>, vector<1x8x4xbf16>
    %13 = vector.shape_cast %12 : vector<1x8x4xbf16> to vector<8x4xbf16>
    %14 = vector.extract_strided_slice %2 {offsets = [0, 8], sizes = [4, 136], strides = [1, 1]} : vector<4x144xbf16> to vector<4x136xbf16>
    %cst_10 = arith.constant dense<0.000000e+00> : vector<8x136xf32>
    %15 = tpu.matmul %13, %14, %cst_10 {dimension_numbers = #tpu.dot_dimension_numbers<[1], [0], [0], [1], [0, 0, 1, 1], [], []>} : vector<8x4xbf16>, vector<4x136xbf16>, vector<8x136xf32> -> vector<8x136xf32>
    %16 = arith.addf %11, %15 : vector<8x136xf32>
    %c0_11 = arith.constant 0 : index
    %c0_12 = arith.constant 0 : index
    %17 = vector.load %arg3[%c0_11, %c0_12] : memref<8x1xf32, #tpu.memory_space<vmem>>, vector<8x1xf32>
    %18 = vector.broadcast %17 : vector<8x1xf32> to vector<8x136xf32>
    %19 = arith.addf %16, %18 : vector<8x136xf32>
    %cst_13 = arith.constant 0.000000e+00 : f32
    %20 = vector.broadcast %cst_13 : f32 to vector<8x136xf32>
    %21 = arith.maximumf %19, %20 : vector<8x136xf32>
    %22 = tpu.iota {dimensions = array<i32: 1>} : vector<1x136xi32>
    %c8_i32 = arith.constant 8 : i32
    %23 = arith.subi %c8_i32, %0 : i32
    %24 = vector.broadcast %23 : i32 to vector<1x136xi32>
    %25 = arith.cmpi sge, %22, %24 : vector<1x136xi32>
    %cst_14 = arith.constant 0.000000e+00 : f32
    %26 = vector.shape_cast %25 : vector<1x136xi1> to vector<1x136xi1>
    %27 = vector.broadcast %26 : vector<1x136xi1> to vector<8x136xi1>
    %28 = vector.broadcast %cst_14 : f32 to vector<8x136xf32>
    %29 = arith.select %27, %21, %28 : vector<8x136xi1>, vector<8x136xf32>
    %30 = arith.truncf %29 : vector<8x136xf32> to vector<8x136xbf16>
    %c0_15 = arith.constant 0 : index
    %c0_16 = arith.constant 0 : index
    %c0_17 = arith.constant 0 : index
    %31 = vector.load %arg4[%c0_15, %c0_16, %c0_17] : memref<3x8x8xbf16, #tpu.memory_space<vmem>>, vector<1x8x8xbf16>
    %32 = vector.shape_cast %31 : vector<1x8x8xbf16> to vector<8x8xbf16>
    %33 = vector.extract_strided_slice %30 {offsets = [0, 0], sizes = [8, 128], strides = [1, 1]} : vector<8x136xbf16> to vector<8x128xbf16>
    %cst_18 = arith.constant dense<0.000000e+00> : vector<8x128xf32>
    %34 = tpu.matmul %32, %33, %cst_18 {dimension_numbers = #tpu.dot_dimension_numbers<[1], [0], [0], [1], [0, 0, 1, 1], [], []>} : vector<8x8xbf16>, vector<8x128xbf16>, vector<8x128xf32> -> vector<8x128xf32>
    %c1_19 = arith.constant 1 : index
    %c0_20 = arith.constant 0 : index
    %c0_21 = arith.constant 0 : index
    %35 = vector.load %arg4[%c1_19, %c0_20, %c0_21] : memref<3x8x8xbf16, #tpu.memory_space<vmem>>, vector<1x8x8xbf16>
    %36 = vector.shape_cast %35 : vector<1x8x8xbf16> to vector<8x8xbf16>
    %37 = vector.extract_strided_slice %30 {offsets = [0, 4], sizes = [8, 128], strides = [1, 1]} : vector<8x136xbf16> to vector<8x128xbf16>
    %cst_22 = arith.constant dense<0.000000e+00> : vector<8x128xf32>
    %38 = tpu.matmul %36, %37, %cst_22 {dimension_numbers = #tpu.dot_dimension_numbers<[1], [0], [0], [1], [0, 0, 1, 1], [], []>} : vector<8x8xbf16>, vector<8x128xbf16>, vector<8x128xf32> -> vector<8x128xf32>
    %39 = arith.addf %34, %38 : vector<8x128xf32>
    %c2_23 = arith.constant 2 : index
    %c0_24 = arith.constant 0 : index
    %c0_25 = arith.constant 0 : index
    %40 = vector.load %arg4[%c2_23, %c0_24, %c0_25] : memref<3x8x8xbf16, #tpu.memory_space<vmem>>, vector<1x8x8xbf16>
    %41 = vector.shape_cast %40 : vector<1x8x8xbf16> to vector<8x8xbf16>
    %42 = vector.extract_strided_slice %30 {offsets = [0, 8], sizes = [8, 128], strides = [1, 1]} : vector<8x136xbf16> to vector<8x128xbf16>
    %cst_26 = arith.constant dense<0.000000e+00> : vector<8x128xf32>
    %43 = tpu.matmul %41, %42, %cst_26 {dimension_numbers = #tpu.dot_dimension_numbers<[1], [0], [0], [1], [0, 0, 1, 1], [], []>} : vector<8x8xbf16>, vector<8x128xbf16>, vector<8x128xf32> -> vector<8x128xf32>
    %44 = arith.addf %39, %43 : vector<8x128xf32>
    %c0_27 = arith.constant 0 : index
    %c0_28 = arith.constant 0 : index
    %45 = vector.load %arg5[%c0_27, %c0_28] : memref<8x1xf32, #tpu.memory_space<vmem>>, vector<8x1xf32>
    %46 = vector.broadcast %45 : vector<8x1xf32> to vector<8x128xf32>
    %47 = arith.addf %44, %46 : vector<8x128xf32>
    %cst_29 = arith.constant 0.000000e+00 : f32
    %48 = vector.broadcast %cst_29 : f32 to vector<8x128xf32>
    %49 = arith.maximumf %47, %48 : vector<8x128xf32>
    %c0_30 = arith.constant 0 : index
    %c0_31 = arith.constant 0 : index
    %c0_32 = arith.constant 0 : index
    %50 = vector.load %arg6[%c0_30, %c0_31, %c0_32] : memref<1x8x4xbf16, #tpu.memory_space<vmem>>, vector<1x8x4xbf16>
    %51 = vector.shape_cast %50 : vector<1x8x4xbf16> to vector<8x4xbf16>
    %52 = vector.extract_strided_slice %2 {offsets = [0, 16], sizes = [4, 128], strides = [1, 1]} : vector<4x144xbf16> to vector<4x128xbf16>
    %cst_33 = arith.constant dense<0.000000e+00> : vector<8x128xf32>
    %53 = tpu.matmul %51, %52, %cst_33 {dimension_numbers = #tpu.dot_dimension_numbers<[1], [0], [0], [1], [0, 0, 1, 1], [], []>} : vector<8x4xbf16>, vector<4x128xbf16>, vector<8x128xf32> -> vector<8x128xf32>
    %c0_34 = arith.constant 0 : index
    %c0_35 = arith.constant 0 : index
    %54 = vector.load %arg7[%c0_34, %c0_35] : memref<8x1xf32, #tpu.memory_space<vmem>>, vector<8x1xf32>
    %55 = vector.broadcast %54 : vector<8x1xf32> to vector<8x128xf32>
    %56 = arith.addf %53, %55 : vector<8x128xf32>
    %57 = arith.addf %49, %56 : vector<8x128xf32>
    %cst_36 = arith.constant 0.000000e+00 : f32
    %58 = vector.broadcast %cst_36 : f32 to vector<8x128xf32>
    %59 = arith.maximumf %57, %58 : vector<8x128xf32>
    %c0_37 = arith.constant 0 : index
    %c0_38 = arith.constant 0 : index
    %60 = vector.load %arg8[%c0_37, %c0_38] : memref<8x128xf32, #tpu.memory_space<vmem>>, vector<8x128xf32>
    tpu.vector_store %arg8[%c0_37, %c0_38], %59 {strides = array<i32>} : memref<8x128xf32, #tpu.memory_space<vmem>>, vector<8x128xf32>,
    return
  }
  func.func @transform_0(%arg0: i32) -> (i32, i32, i32) {
    %c0_i32 = arith.constant 0 : i32
    %c0_i32_0 = arith.constant 0 : i32
    %c0_i32_1 = arith.constant 0 : i32
    return %arg0, %c0_i32, %c0_i32_0 : i32, i32, i32
  }
  func.func @transform_1(%arg0: i32) -> (i32, i32, i32) {
    %c0_i32 = arith.constant 0 : i32
    %c0_i32_0 = arith.constant 0 : i32
    %c0_i32_1 = arith.constant 0 : i32
    %c0_i32_2 = arith.constant 0 : i32
    return %c0_i32, %c0_i32_0, %c0_i32_1 : i32, i32, i32
  }
  func.func @transform_2(%arg0: i32) -> (i32, i32) {
    %c0_i32 = arith.constant 0 : i32
    %c0_i32_0 = arith.constant 0 : i32
    %c0_i32_1 = arith.constant 0 : i32
    return %c0_i32, %c0_i32_0 : i32, i32
  }
  func.func @transform_3(%arg0: i32) -> (i32, i32, i32) {
    %c0_i32 = arith.constant 0 : i32
    %c0_i32_0 = arith.constant 0 : i32
    %c0_i32_1 = arith.constant 0 : i32
    %c0_i32_2 = arith.constant 0 : i32
    return %c0_i32, %c0_i32_0, %c0_i32_1 : i32, i32, i32
  }
  func.func @transform_4(%arg0: i32) -> (i32, i32) {
    %c0_i32 = arith.constant 0 : i32
    %c0_i32_0 = arith.constant 0 : i32
    %c0_i32_1 = arith.constant 0 : i32
    return %c0_i32, %c0_i32_0 : i32, i32
  }
  func.func @transform_5(%arg0: i32) -> (i32, i32, i32) {
    %c0_i32 = arith.constant 0 : i32
    %c0_i32_0 = arith.constant 0 : i32
    %c0_i32_1 = arith.constant 0 : i32
    %c0_i32_2 = arith.constant 0 : i32
    return %c0_i32, %c0_i32_0, %c0_i32_1 : i32, i32, i32
  }
  func.func @transform_6(%arg0: i32) -> (i32, i32) {
    %c0_i32 = arith.constant 0 : i32
    %c0_i32_0 = arith.constant 0 : i32
    %c0_i32_1 = arith.constant 0 : i32
    return %c0_i32, %c0_i32_0 : i32, i32
  }
  func.func @transform_7(%arg0: i32) -> (i32, i32) {
    %c0_i32 = arith.constant 0 : i32
    %c0_i32_0 = arith.constant 0 : i32
    return %c0_i32, %arg0 : i32, i32
  }
}

</mosaic_0001>

<bundles_post_ra>
// kernel: tpu_custom_call.1
= control target key start
LH: loop header
LB: loop body
LE: loop exit
PB: predicated region body
PF: predicated region fallthrough
CT: control target
= control target key end

     0   :  { %12 = vsyncpa [#allocation3], 0  ;;  %s1193_s0 = inlined_call_operand.vmem [shape: bf16[2,4,144], index: 0, kind: input, shape index: {}]   ;;  %s1194_s1 = inlined_call_operand.vmem [shape: bf16[3,8,4], index: 1, kind: input, shape index: {}]   ;;  %s1195_s2 = inlined_call_operand.vmem [shape: f32[8,1], index: 2, kind: input, shape index: {}]   ;;  %s1196_s3 = inlined_call_operand.vmem [shape: bf16[3,8,8], index: 3, kind: input, shape index: {}]   ;;  %s1197_s4 = inlined_call_operand.vmem [shape: f32[8,1], index: 4, kind: input, shape index: {}]   ;;  %s1198_s5 = inlined_call_operand.vmem [shape: bf16[1,8,4], index: 5, kind: input, shape index: {}]   ;;  %s1199_s6 = inlined_call_operand.vmem [shape: f32[8,1], index: 6, kind: input, shape index: {}]   ;;  %s1200_s7 = inlined_call_operand.hbm [shape: f32[8,256], index: 7, kind: output, shape index: {}]  }
   0x1   :  { %14 = vsyncpa [#allocation3 + $0x1], 0  ;;  %s1004_s24 = smov 0   ;;  %s1006_s25 = smov 0  }
   0x2   :  { %s1008_s26 = smov 0   ;;  %s1010_s27 = smov 0  }
   0x3 LB: > { %s1025_s28 = sadd.s32 4294967295, %s955_s27   ;;  %s786_s29 = sadd.s32 4294967294, %s955_s27   ;;  %s955_s27 = sphi %s1010_s27, %s1206_s27   ;;  %s951_s26 = sphi %s1008_s26, %s1205_s26   ;;  %s947_s25 = sphi %s1006_s25, %s1204_s25   ;;  %s943_s24 = sphi %s1004_s24, %s1203_s24  }
   0x4   : > { %s1029_s30 = sadd.s32 1, %s955_s27   ;;  %s179_s8 = sadd.s32 1, %s951_s26 }
   0x5   : > { %s176_s9 = ssub.s32 %s955_s27, %s1029_s30  ;;  %p189_p0 = scmp.ne.s32.totalorder %s951_s26, %s947_s25 }
   0x6   : > { %p177_p1 = scmp.eq.s32.totalorder %s176_s9, 0  ;;  %p190_p2 = scmp.eq.s32.totalorder %s1025_s28, 1 }
   0x7   : > { %p195_p3 = scmp.ne.s32.totalorder %s947_s25, %s943_s24  ;;  %p196_p4 = scmp.eq.s32.totalorder %s786_s29, 1 }
   0x8   : > { %s1040_s10 = scalar_select %p177_p1, %s951_s26, %s179_s8  }
   0x9   : > { %p1042_p5 = por %p190_p2, %p189_p0  ;;  %p1046_p6 = por %p196_p4, %p195_p3 }
   0xa   : > { %p789_p7 = scmp.ge.s32.totalorder %s955_s27, 1  ;;  %p240_p8 = scmp.lt.s32.totalorder %s955_s27, 3 }
   0xc   : > { %p241_p9 = pnand %p789_p7, %p240_p8 }
   0xd   : > { %p272_p10 = scmp.lt.s32.totalorder (!%p241_p9), %s1025_s28, 1  ;;  %v957_v0 = vmov (!%p241_p9), 0   ;;  %vm302_vm0 = vcmask (!%p241_p9), 1041408   ;;  %s958_s18 = smov (!%p241_p9), 124   ;;  %vm298_vm1 = vcmask (!%p241_p9), 31744   ;;  %v460_v5 = vld [vmem:[%s1195_s2] sm:$0xff] (!%p241_p9)  ;;  %v470_v26 = vlaneseq (!%p241_p9) }
   0xe   : > { %244 = sbr.rel (%p241_p9) target bundleno = 747 (0x2eb), region = 48  ;;  %341 = vmatprep.mubr.bf16.mxu0 (!%p241_p9), %v957_v0  ;;  %391 = vmatprep.mubr.bf16.mxu1 (!%p241_p9), %v957_v0  ;;  %s959_s19 = smov (!%p241_p9), 120   ;;  %v280_v4 = vld [vmem:[%s1194_s1] sm:$0xf] (!%p241_p9)  ;;  %vm296_vm2 = vcmask (!%p241_p9), 1014784   ;;  %vm406_vm3 = vcmask (!%p241_p9), 982016  }
   0xf   : > { %891 = vset.pattern.permute.xlu0 (!%p241_p9), %v957_v0  ;;  %892 = vset.pattern.permute.xlu1 (!%p241_p9), %v957_v0  ;;  %v794_v13 = vld [vmem:[%s1194_s1 + $0x4] sm:$0xf] (!%p241_p9)  ;;  %v800_v15 = vld [vmem:[%s1194_s1 + $0x8] sm:$0xf] (!%p241_p9)  ;;  %v960_v20 = vmov (!%p241_p9), 0.0   ;;  %v471_v28 = vand.u32 (!%p241_p9), 127, %v470_v26 }
  0x10   : > { %vm961_vm5 = vmmov (!%p241_p9), 0   ;;  %vm499_vm7 = vcmask (!%p241_p9), 1043456   ;;  %vm495_vm8 = vcmask (!%p241_p9), 64512   ;;  %v485_v47 = vld [vmem:[%s1196_s3] sm:$0xf] (!%p241_p9)  ;;  %s962_s20 = smov (!%p241_p9), 112  }
  0x11   : > { %v472_v36 = vadd.s32 (!%p241_p9), 128, %v471_v28  ;;  %v643_v48 = vld [vmem:[%s1197_s4] sm:$0xff] (!%p241_p9)  ;;  %vm662_vm9 = vcmask (!%p241_p9), 916480   ;;  %v806_v63 = vld [vmem:[%s1196_s3 + $0x8] sm:$0xf] (!%p241_p9)  ;;  %s269_s16 = sand.u32 (!%p241_p9), 1, %s947_s25  }
  0x12   : > { %v652_v49 = vld [vmem:[%s1199_s6] sm:$0xff] (!%p241_p9) }
  0x13   : > { %v803_v55 = vld [vmem:[%s1196_s3 + $0x4] sm:$0xf] (!%p241_p9) }
  0x15   : > { %s273_s13 = scalar_select %p272_p10, %s1025_s28, 1 }
  0x17   : > { %s813_s14 = sshll.u32 %s273_s13, 2 }
  0x18   : > { %s276_s17 = scalar_lea.vmem %s1193_s0, %s813_s14  ;;  %s793_s14 = sshll.u32 %s1025_s28, 7 }
  0x19   : > { %v1057_v1 = vld.sshfl [vmem:[%s276_s17] sm:$0x33 pattern:$0x76325410]  ;;  %s473_s15 = ssub.s32 8, %s793_s14  ;;  %s790_s17 = sshll.u32 %s269_s16, 3 }
  0x1a   : > { %292 = vrot.lane.b32.xlu0 %v1057_v1, %s958_s18  ;;  %402 = vrot.lane.b32.xlu1 %v1057_v1, %s959_s19  ;;  %v1065_v2 = vcombine.high %v1057_v1, %v1057_v1  ;;  %v354_v3 = vsel %vm302_vm0, %v1057_v1, 0  ;;  %v474_v33 = vstv %s473_s15  ;;  %s1151_s29 = scalar_lea.hbm %s1200_s7, %s793_s14 }
  0x1b   : > { %vm475_vm4 = vcmp.ge.s32.totalorder %v471_v28, %v474_v33  ;;  %vm476_vm6 = vcmp.ge.s32.totalorder %v472_v36, %v474_v33 }
  0x1c   : > { %798 = vmatprep.subr.msk.bf16.mxu1 %vm302_vm0, %v1065_v2 }
  0x1d   : > { %360 = vmatpush1.bf16.msra.mxu1 %v354_v3 }
  0x1e   : > { %294 = vrot.lane.b32.xlu0 %v1065_v2, %s958_s18  ;;  %404 = vrot.lane.b32.xlu1 %v1065_v2, %s959_s19 }
  0x1f   : > { %822 = vmatprep.subr.bf16.mxu1 %v960_v20 }
  0x20   : > { %799 = vmatmul.mubr.msk.bf16.vlgmr.msra.gmra.mrb[0].mxu1 %vm298_vm1, %v280_v4 }
  0x21   : > { %824 = vmatprep.mubr.msk.bf16.mxu1 %vm961_vm5, %v960_v20 }
  0x22   : > { %463 = vperm.xlu0 %891, %v460_v5  }
  0x8c   : > { %v293_v6 = vpop.permute.xlu0 %292  ;;  %v403_v7 = vpop.permute.xlu1 %402 }
  0x90   : > { %v295_v8 = vpop.permute.xlu0 %294  ;;  %v405_v9 = vpop.permute.xlu1 %404 }
  0x91   : > { %796 = vmatprep.subr.msk.bf16.mxu0 %vm302_vm0, %v295_v8  ;;  %v297_v10 = vsel %vm296_vm2, %v293_v6, %v295_v8  ;;  %v407_v11 = vsel %vm406_vm3, %v403_v7, %v405_v9 }
  0x92   : > { %v304_v12 = vsel %vm302_vm0, %v297_v10, 0  ;;  %v412_v14 = vsel %vm302_vm0, %v407_v11, 0 }
  0x93   : > { %310 = vmatpush1.bf16.msra.mxu0 %v304_v12 }
  0x94   : > { %801 = vmatprep.subr.msk.bf16.mxu0 %vm302_vm0, %v405_v9 }
  0x96   : > { %797 = vmatmul.mubr.msk.bf16.vlgmr.msra.gmra.mrb[0].mxu0 %vm298_vm1, %v794_v13 }
  0x97   : > { %418 = vmatpush1.bf16.msra.mxu0 %v412_v14  ;;  %449 = vmatprep.mubr.bf16.mxu0 %v957_v0  ;;  %v651_v0 = vld [vmem:[%s1198_s5] sm:$0xf] }
  0x98   : > { %828 = vmatprep.subr.bf16.mxu0 %v960_v20 }
  0x9e   : > { %802 = vmatmul.mubr.msk.bf16.vlgmr.msra.gmra.mrb[4].mxu0 %vm298_vm1, %v800_v15 }
  0x9f   : > { %830 = vmatprep.mubr.msk.bf16.mxu0 %vm961_vm5, %v960_v20 }
  0xa1   : > { %v464_v30 = vpop.permute.xlu0 %463 }
  0xf3   : > { %v393_v16 = vpop.f32.mrb[0].mxu1 }
  0xf4   : > { %v395_v17 = vpop.f32.mrb[1].mxu1 }
  0xf5   : > { %v397_v18 = vpop.f32.mrb[2].mxu1 }
  0xf6   : > { %v398_v19 = vpop.f32.mrb[3].mxu1 }
 0x169   : > { %v343_v21 = vpop.f32.mrb[0].mxu0 }
 0x16a   : > { %v394_v22 = vadd.f32 %v393_v16, %v343_v21  ;;  %v345_v23 = vpop.f32.mrb[1].mxu0 }
 0x16b   : > { %v396_v24 = vadd.f32 %v395_v17, %v345_v23  ;;  %v347_v25 = vpop.f32.mrb[2].mxu0 }
 0x16c   : > { %v348_v27 = vpop.f32.mrb[3].mxu0 }
 0x171   : > { %v451_v29 = vpop.f32.mrb[4].mxu0 }
 0x172   : > { %v458_v31 = vadd.f32 %v451_v29, %v394_v22  ;;  %v453_v32 = vpop.f32.mrb[5].mxu0 }
 0x173   : > { %v459_v34 = vadd.f32 %v453_v32, %v396_v24  ;;  %v455_v35 = vpop.f32.mrb[6].mxu0 }
 0x174   : > { %v466_v37 = vadd.f32 %v464_v30, %v458_v31  ;;  %v456_v38 = vpop.f32.mrb[7].mxu0 }
 0x175   : > { %v467_v39 = vadd.f32 %v464_v30, %v459_v34 }
 0x176   : > { %v468_v40 = vmax.f32 %v466_v37, 0.0 }
 0x177   : > { %v469_v41 = vmax.f32 %v467_v39, 0.0 }
 0x178   : > { %v481_v42 = vsel %vm475_vm4, %v468_v40, 0.0 }
 0x179   : > { %v483_v43 = vpack.c.bf16 %v481_v42, %v481_v42  ;;  %v482_v44 = vsel %vm476_vm6, %v469_v41, 0.0 }
 0x17a   : > { %v484_v46 = vpack.c.bf16 %v482_v44, %v482_v44 }
 0x17b   : > { %591 = vrot.lane.b32.xlu0 %v483_v43, %s959_s19  ;;  %490 = vrot.lane.b32.xlu1 %v483_v43, %s958_s18  ;;  %v547_v45 = vsel %vm499_vm7, %v483_v43, 0 }
 0x17c   : > { %829 = vmatpush3.bf16.msra.mxu0 %v547_v45 }
 0x17d   : > { %840 = vmatprep.subr.bf16.mxu0 %v960_v20 }
 0x17f   : > { %658 = vrot.lane.b32.xlu0 %v1057_v1, %s962_s20  ;;  %492 = vrot.lane.b32.xlu1 %v484_v46, %s958_s18  ;;  %s714_s18 = scalar_lea.sflag [#allocation3], %s269_s16 }
 0x180   : > { %831 = vmatmul.mubr.msk.bf16.vlgmr.msra.gmra.mrb[8].mxu0 %vm495_vm8, %v485_v47 }
 0x181   : > { %842 = vmatprep.mubr.msk.bf16.mxu0 %vm961_vm5, %v960_v20 }
 0x183   : > { %646 = vperm.xlu0 %891, %v643_v48   ;;  %593 = vrot.lane.b32.xlu1 %v484_v46, %s959_s19  ;;  %s963_s19 = smov [#allocation2]  }
 0x184   : > { %s897_s9 = sshll.u32 %s963_s19, 4  ;;  %s898_s9 = int_to_ptr.vmem [resolvable:$false] %s897_s9 }
 0x185   : > { %s899_s28 = scalar_lea.vmem %s898_s9, 256 }
 0x187   : > { %660 = vrot.lane.b32.xlu1 %v1065_v2, %s962_s20  ;;  %s271_s20 = scalar_lea.vmem [#allocation2], %s790_s17 }
 0x188   : > { %s727_s21 = sshll.u32 %s271_s20, 4  ;;  %s1153_s21 = int_to_ptr.vmem [resolvable:$true] %s727_s21 }
 0x189   : > { %s893_s8 = scalar_lea.vmem %s1153_s21, 128  ;;  %p900_p0 = scmp.lt.s32.totalorder %s1153_s21, %s898_s9 }
 0x18a   : > { %p894_p11 = scmp.ne.s32.totalorder %s1153_s21, %s893_s8  ;;  %p901_p1 = scmp.lt.s32.totalorder %s899_s28, %s893_s8 }
 0x18b   : > { %655 = vperm.xlu1 %892, %v652_v49  }
 0x18c   : > { %p895_p12 = pnand %p894_p11, %p1042_p5  ;;  %p902_p2 = por %p901_p1, %p900_p0 }
 0x18e   : > { %p896_p13 = pneg %p895_p12 }
 0x190   : > { %p903_p3 = pnand %p902_p2, %p896_p13 }
 0x1ed   : > { %v491_v50 = vpop.permute.xlu1 %490  ;;  %v592_v53 = vpop.permute.xlu0 %591 }
 0x1f1   : > { %v493_v51 = vpop.permute.xlu1 %492  ;;  %v659_v59 = vpop.permute.xlu0 %658 }
 0x1f2   : > { %v494_v52 = vsel %vm296_vm2, %v491_v50, %v493_v51 }
 0x1f3   : > { %v501_v54 = vsel %vm499_vm7, %v494_v52, 0 }
 0x1f4   : > { %823 = vmatpush3.bf16.msra.mxu1 %v501_v54 }
 0x1f5   : > { %v594_v56 = vpop.permute.xlu1 %593  ;;  %834 = vmatprep.subr.bf16.mxu1 %v960_v20 }
 0x1f6   : > { %v595_v57 = vsel %vm406_vm3, %v592_v53, %v594_v56 }
 0x1f7   : > { %v600_v58 = vsel %vm499_vm7, %v595_v57, 0  ;;  %825 = vmatmul.mubr.msk.bf16.vlgmr.msra.gmra.mrb[4].mxu1 %vm495_vm8, %v803_v55 }
 0x1f8   : > { %835 = vmatpush3.bf16.msra.mxu1 %v600_v58  ;;  %836 = vmatprep.mubr.msk.bf16.mxu1 %vm961_vm5, %v960_v20 }
 0x1f9   : > { %v661_v60 = vpop.permute.xlu1 %660 }
 0x1fa   : > { %v663_v61 = vsel %vm662_vm9, %v659_v59, %v661_v60 }
 0x1fb   : > { %v668_v62 = vsel %vm302_vm0, %v663_v61, 0 }
 0x1fc   : > { %841 = vmatpush3.bf16.msra.mxu0 %v668_v62 }
 0x1ff   : > { %837 = vmatmul.mubr.msk.bf16.vlgmr.msra.gmra.mrb[8].mxu1 %vm495_vm8, %v806_v63  ;;  %843 = vmatmul.mubr.msk.bf16.vlgmr.msra.gmra.mrb[12].mxu0 %vm298_vm1, %v651_v0 }
 0x202   : > { %v647_v10 = vpop.permute.xlu0 %646 }
 0x20a   : > { %v656_v11 = vpop.permute.xlu1 %655 }
 0x253   : > { %v583_v1 = vpop.f32.mrb[8].mxu0 }
 0x254   : > { %v832_v2 = vpop.f32.mrb[9].mxu0 }
 0x255   : > { %v586_v3 = vpop.f32.mrb[10].mxu0 }
 0x256   : > { %v833_v4 = vpop.f32.mrb[11].mxu0 }
 0x2ca   : > { %v537_v5 = vpop.f32.mrb[4].mxu1 }
 0x2cb   : > { %v826_v6 = vpop.f32.mrb[5].mxu1  ;;  %v584_v7 = vadd.f32 %v583_v1, %v537_v5 }
 0x2cc   : > { %v540_v8 = vpop.f32.mrb[6].mxu1 }
 0x2cd   : > { %v827_v9 = vpop.f32.mrb[7].mxu1 }
 0x2d2   : > { %v636_v12 = vpop.f32.mrb[8].mxu1  ;;  %v704_v13 = vpop.f32.mrb[12].mxu0 }
 0x2d3   : > { %v642_v14 = vadd.f32 %v636_v12, %v584_v7  ;;  %v838_v15 = vpop.f32.mrb[9].mxu1  ;;  %v844_v16 = vpop.f32.mrb[13].mxu0  ;;  %v705_v20 = vadd.f32 %v704_v13, %v656_v11 }
 0x2d4   : > { %v639_v17 = vpop.f32.mrb[10].mxu1  ;;  %v707_v18 = vpop.f32.mrb[14].mxu0 }
 0x2d5   : > { %v649_v19 = vadd.f32 %v647_v10, %v642_v14  ;;  %v839_v21 = vpop.f32.mrb[11].mxu1  ;;  %v845_v22 = vpop.f32.mrb[15].mxu0 }
 0x2d7   : > { %v650_v23 = vmax.f32 %v649_v19, 0.0 }
 0x2d9   : > { %v710_v24 = vadd.f32 %v705_v20, %v650_v23 }
 0x2db   : > { %v711_v25 = vmax.f32 %v710_v24, 0.0 }
 0x2dd   : > { %712 = vst [vmem:[%s271_s20] sm:$0xff] %v711_v25 }
 0x2de   : > { %906 = shalt.err (!%p903_p3)
}
 0x2df   : > { %s907_s14 = scalar_lea.hbm %s1151_s29, 128  ;;  %s911_s16 = scalar_lea.hbm %s1200_s7, 256 }
 0x2e0   : > { %p908_p4 = scmp.ne.s32.totalorder %s1151_s29, %s907_s14  ;;  %p912_p9 = scmp.lt.u32.totalorder %s1151_s29, %s1200_s7 }
 0x2e1   : > { %p913_p10 = scmp.lt.u32.totalorder %s911_s16, %s907_s14  ;;  %p915_p12 = scmp.lt.u32.totalorder %s907_s14, %s1151_s29 }
 0x2e2   : > { %p909_p7 = pnand %p908_p4, %p1042_p5 }
 0x2e3   : > { %p914_p11 = por %p913_p10, %p912_p9 }
 0x2e4   : > { %p910_p8 = pneg %p909_p7 }
 0x2e5   : > { %p916_p13 = por %p915_p12, %p914_p11 }
 0x2e7   : > { %p917_p0 = pnand %p916_p13, %p910_p8 }
 0x2e9   : > { %920 = shalt.err (!%p917_p0)
}
 0x2ea   : > { %846 = dma.vmem_to_hbm [thread:$0]  (%p1042_p5), %s1153_s21, 128, %s1151_s29, %s714_s18  }
 0x2eb PF: > { %p852_p1 = scmp.ge.s32.totalorder %s955_s27, 2  ;;  %s739_s22 = sand.u32 1, %s943_s24  }
 0x2ec   : > { %s740_s23 = scalar_lea.sflag [#allocation3], %s739_s22 }
 0x2ed   : > { %p849_p2 = pnand %p852_p1, %p1046_p6 }
 0x2ef   : > { %938 = dma.done.wait (!%p849_p2), %s740_s23, 128  }
 0x2f0   : > { %940 = vsyncadd (!%p849_p2), %s740_s23, 4294967168  ;;  %p17_p3 = scmp.ge.s32.totalorder %s1029_s30, 4   ;;  %s1203_s24 = smov %s947_s25 }
 0x2f1   : > { %s1204_s25 = smov %s951_s26  ;;  %s1205_s26 = smov %s1040_s10 }
 0x2f2   : > { %s1206_s27 = smov %s1029_s30  ;;  %19 = sbr.rel (!%p17_p3) target bundleno = 3 (0x3), region = 87 }
 0x2f9   :  { %745 = vsyncpa [#allocation3], 1 }
 0x2fa   :  { %747 = vsyncpa [#allocation3 + $0x1], 1 }

</bundles_post_ra>
